<compile_context>
chip_gen: v7x
topology: tpu7x:2x2x1
jax: 0.10.0
libtpu: 0.0.40
codegen_flags: <defaults>
</compile_context>

<pallas_src>
import jax
import jax.numpy as jnp
from jax.experimental import pallas as pl
from jax.experimental.pallas import tpu as pltpu

_LANE = 128      # lane width (last dim)
_SUBLANE = 8     # f32 sublane width (second-to-last dim)


def _round_up(x, m):
    return ((x + m - 1) // m) * m


def _cond_embed_kernel(y_ref, params_ref, w2_ref, out_ref):
    # params_ref rows (static slices, kept 2-D): 0 -> w1 row, 1 -> b1, 2 -> b2.
    w1 = params_ref[0:1, :]                     # [1, Dp]
    b1 = params_ref[1:2, :]                     # [1, Dp]
    b2 = params_ref[2:3, :]                     # [1, Dp]
    # First linear: (Bp,1) * (1,Dp) + (1,Dp) -> (Bp,Dp)   (VPU broadcast), f32.
    h = y_ref[...] * w1 + b1
    # SiLU: EUP sigmoid + VPU mul, kept in f32 (no bf16 VPU/EUP on v5e).
    h = h * jax.nn.sigmoid(h)
    # Second linear on the MXU: (Bp,Dp) @ (Dp,Dp) + (1,Dp), f32 accumulate.
    # Cast to the (possibly bf16) weight dtype only for the matmul operands;
    # pin precision so f32 operands never drop to a single bf16 pass.
    out = jnp.dot(h.astype(w2_ref.dtype), w2_ref[...],
                  preferred_element_type=jnp.float32,
                  precision=jax.lax.Precision.HIGHEST) + b2
    out_ref[...] = out.astype(out_ref.dtype)


def prepare_condition_embedding(w1, b1, w2, b2, *, matmul_dtype=None):
    """One-time (init-time) preprocessing of the static parameters.

    w1: [dim, 1]    torch nn.Linear(1, dim).weight
    b1: [dim]       torch nn.Linear(1, dim).bias
    w2: [dim, dim]  torch nn.Linear(dim, dim).weight
    b2: [dim]       torch nn.Linear(dim, dim).bias

    Returns a dict with lane-dense padded arrays reused by every forward call.
    """
    dim = b1.shape[0]
    Dp = _round_up(dim, _LANE)

    if matmul_dtype is None:
        # bf16 matmul operands only pay off (and only matter for VMEM) once dim
        # grows into the hundreds+; f32 accumulation is kept either way.
        matmul_dtype = jnp.bfloat16 if dim >= 512 else jnp.float32

    # Stack the three tiny row-parameters into one [3, Dp] array -> one DMA
    # (it pads to 8 sublanes in VMEM anyway).
    params = jnp.zeros((3, Dp), jnp.float32)
    params = params.at[0, :dim].set(w1.reshape(dim).astype(jnp.float32))  # W1[:, 0]
    params = params.at[1, :dim].set(b1.astype(jnp.float32))
    params = params.at[2, :dim].set(b2.astype(jnp.float32))

    # Transposed + zero-padded second weight so the kernel computes h @ w2.
    # Zero padding is numerically exact: padded h columns are SiLU(0+b1_pad=0)=0
    # only because b1 padding is 0, and padded w2 rows/cols are 0 too, so they
    # contribute nothing to the [:dim] output slice.
    w2_t = (jnp.zeros((Dp, Dp), jnp.float32)
            .at[:dim, :dim].set(w2.T.astype(jnp.float32))
            .astype(matmul_dtype))

    return {"dim": dim, "Dp": Dp, "params": params, "w2_t": w2_t}


def condition_embedding(y, prepared):
    """ConditionEmbedding forward. y: [B] -> [B, dim] float32."""
    dim = prepared["dim"]
    Dp = prepared["Dp"]
    params = prepared["params"]
    w2_t = prepared["w2_t"]

    B = y.shape[0]
    Bp = _round_up(B, _SUBLANE)

    # Hot-path y handling: pad only when needed, otherwise a free reshape.
    y2 = y.astype(jnp.float32)
    if Bp != B:
        y2 = jnp.pad(y2, (0, Bp - B))
    y2 = y2.reshape(Bp, 1)

    vmem = pl.BlockSpec(memory_space=pltpu.MemorySpace.VMEM)

    w2_bytes = w2_t.size * jnp.dtype(w2_t.dtype).itemsize
    cost = pl.CostEstimate(
        flops=2 * Bp * Dp * Dp + 4 * Bp * Dp,          # matmul + linear1 + silu mul
        transcendentals=Bp * Dp,                       # sigmoid
        bytes_accessed=4 * Bp + 4 * 3 * Dp + w2_bytes + 4 * Bp * Dp,
    )

    # VMEM plan: single-buffered (no grid), so the footprint is just the inputs,
    # the padded output, and matmul scratch. Raise the scoped limit only when it
    # would exceed the 16 MiB default (v5e); stay well under v7x's 64 MiB.
    kwargs = {}
    vmem_needed = 4 * Bp + 4 * 3 * Dp + w2_bytes + 2 * 4 * Bp * Dp
    if vmem_needed > (16 << 20):
        kwargs["compiler_params"] = pltpu.CompilerParams(
            vmem_limit_bytes=min(vmem_needed + (4 << 20), 56 << 20))

    out_p = pl.pallas_call(
        _cond_embed_kernel,
        out_shape=jax.ShapeDtypeStruct((Bp, Dp), jnp.float32),
        in_specs=[vmem, vmem, vmem],
        out_specs=vmem,
        cost_estimate=cost,
        **kwargs,
    )(y2, params, w2_t)

    # Padded rows beyond B hold SiLU(b1)@w2+b2 garbage; the slice removes them.
    return out_p[:B, :dim]


def _ref_forward(y, w1, b1, w2, b2):
    """Pure-JAX reference matching the PyTorch module exactly."""
    h = y[:, None] @ w1.T + b1           # Linear(1, dim)
    h = h * jax.nn.sigmoid(h)            # SiLU
    return h @ w2.T + b2                 # Linear(dim, dim)


if __name__ == "__main__":
    B, dim = 8, 32

    key = jax.random.PRNGKey(0)
    k_y, k_w1, k_b1, k_w2, k_b2 = jax.random.split(key, 5)

    # Deterministic synthetic parameters (torch Linear shapes).
    y = jax.random.normal(k_y, (B,), dtype=jnp.float32)
    w1 = jax.random.uniform(k_w1, (dim, 1), minval=-1.0, maxval=1.0,
                            dtype=jnp.float32)                 # Linear(1, dim).weight
    b1 = jax.random.uniform(k_b1, (dim,), minval=-1.0, maxval=1.0,
                            dtype=jnp.float32)                 # Linear(1, dim).bias
    bound2 = 1.0 / (dim ** 0.5)
    w2 = jax.random.uniform(k_w2, (dim, dim), minval=-bound2, maxval=bound2,
                            dtype=jnp.float32)                 # Linear(dim, dim).weight
    b2 = jax.random.uniform(k_b2, (dim,), minval=-bound2, maxval=bound2,
                            dtype=jnp.float32)                 # Linear(dim, dim).bias

    # One-time init: padding/stacking/transposing the static parameters happens
    # here, NOT per forward call.
    prepared = prepare_condition_embedding(w1, b1, w2, b2)
    prepared = jax.tree_util.tree_map(
        lambda x: jax.block_until_ready(x) if isinstance(x, jax.Array) else x,
        prepared)

    out = condition_embedding(y, prepared)
    jax.block_until_ready(out)

    ref = _ref_forward(y, w1, b1, w2, b2)
    assert out.shape == (B, dim), out.shape
    assert jnp.allclose(out, ref, atol=1e-5, rtol=1e-5), \
        float(jnp.max(jnp.abs(out - ref)))

    print("KERNEL_OK")
</pallas_src>

<mosaic_0001>
module attributes {stable_mosaic.version = 11 : i64} {
  func.func @_cond_embed_kernel(%arg0: memref<8x1xf32, #tpu.memory_space<vmem>>, %arg1: memref<3x128xf32, #tpu.memory_space<vmem>>, %arg2: memref<128x128xf32, #tpu.memory_space<vmem>>, %arg3: memref<8x128xf32, #tpu.memory_space<vmem>>) attributes {dimension_semantics = [], scalar_prefetch = 0 : i64, scratch_operands = 0 : i64, tpu.core_type = #tpu.core_type<tc>} {
    %c0 = arith.constant 0 : index
    %c0_0 = arith.constant 0 : index
    %0 = vector.load %arg1[%c0, %c0_0] : memref<3x128xf32, #tpu.memory_space<vmem>>, vector<1x128xf32>
    %c1 = arith.constant 1 : index
    %c0_1 = arith.constant 0 : index
    %1 = vector.load %arg1[%c1, %c0_1] : memref<3x128xf32, #tpu.memory_space<vmem>>, vector<1x128xf32>
    %c2 = arith.constant 2 : index
    %c0_2 = arith.constant 0 : index
    %2 = vector.load %arg1[%c2, %c0_2] : memref<3x128xf32, #tpu.memory_space<vmem>>, vector<1x128xf32>
    %c0_3 = arith.constant 0 : index
    %c0_4 = arith.constant 0 : index
    %3 = vector.load %arg0[%c0_3, %c0_4] : memref<8x1xf32, #tpu.memory_space<vmem>>, vector<8x1xf32>
    %4 = vector.broadcast %3 : vector<8x1xf32> to vector<8x128xf32>
    %5 = vector.broadcast %0 : vector<1x128xf32> to vector<8x128xf32>
    %6 = arith.mulf %4, %5 : vector<8x128xf32>
    %7 = vector.broadcast %1 : vector<1x128xf32> to vector<8x128xf32>
    %8 = arith.addf %6, %7 : vector<8x128xf32>
    %9 = arith.negf %8 : vector<8x128xf32>
    %10 = math.exp %9 : vector<8x128xf32>
    %cst = arith.constant 1.000000e+00 : f32
    %11 = vector.broadcast %cst : f32 to vector<8x128xf32>
    %12 = arith.addf %11, %10 : vector<8x128xf32>
    %13 = arith.divf %11, %12 : vector<8x128xf32>
    %14 = arith.mulf %8, %13 : vector<8x128xf32>
    %c0_5 = arith.constant 0 : index
    %c0_6 = arith.constant 0 : index
    %15 = vector.load %arg2[%c0_5, %c0_6] : memref<128x128xf32, #tpu.memory_space<vmem>>, vector<128x128xf32>
    %cst_7 = arith.constant dense<0.000000e+00> : vector<8x128xf32>
    %16 = tpu.matmul %14, %15, %cst_7 {dimension_numbers = #tpu.dot_dimension_numbers<[1], [0], [0], [1], [0, 0, 1, 1], [], []>, precision = #tpu.contract_precision<fp32>} : vector<8x128xf32>, vector<128x128xf32>, vector<8x128xf32> -> vector<8x128xf32>
    %17 = vector.broadcast %2 : vector<1x128xf32> to vector<8x128xf32>
    %18 = arith.addf %16, %17 : vector<8x128xf32>
    %c0_8 = arith.constant 0 : index
    %c0_9 = arith.constant 0 : index
    %19 = vector.load %arg3[%c0_8, %c0_9] : memref<8x128xf32, #tpu.memory_space<vmem>>, vector<8x128xf32>
    tpu.vector_store %arg3[%c0_8, %c0_9], %18 {strides = array<i32>} : memref<8x128xf32, #tpu.memory_space<vmem>>, vector<8x128xf32>,
    return
  }
}

</mosaic_0001>

<bundles_post_ra>
// kernel: tpu_custom_call.1
= control target key start
LH: loop header
LB: loop body
LE: loop exit
PB: predicated region body
PF: predicated region fallthrough
CT: control target
= control target key end

     0   :  { %8 = vsyncpa [#allocation3], 0  ;;  %s1605_s0 = inlined_call_operand.vmem [shape: f32[8,1], index: 0, kind: input, shape index: {}]   ;;  %s1606_s1 = inlined_call_operand.vmem [shape: f32[3,128], index: 1, kind: input, shape index: {}]   ;;  %s1607_s2 = inlined_call_operand.hbm [shape: f32[128,128], index: 2, kind: input, shape index: {}]   ;;  %s1608_s3 = inlined_call_operand.hbm [shape: f32[8,128], index: 3, kind: output, shape index: {}]  }
   0x1   :  { %9 = vsyncpa [#allocation4], 0  ;;  %s1263_s12 = smov [#allocation2]   ;;  %s1215_s16 = scalar_lea.hbm %s1607_s2, 2048 }
   0x2   :  { %s19_s13 = sshll.u32 %s1263_s12, 4  ;;  %p1216_p0 = scmp.ne.s32.totalorder %s1607_s2, %s1215_s16  ;;  %s20_s13 = int_to_ptr.vmem [resolvable:$true] %s19_s13 }
   0x3   :  { %p1219_p1 = scmp.lt.u32.totalorder %s1215_s16, %s1607_s2 }
   0x5   :  { %p1221_p2 = pnand %p1219_p1, %p1216_p0 }
   0x7   :  { %1224 = shalt.err (!%p1221_p2)
}
   0x8   :  { %s1225_s21 = scalar_lea.vmem %s20_s13, 2048  ;;  %p1230_p4 = scmp.lt.s32.totalorder %s20_s13, %s20_s13 }
   0x9   :  { %p1226_p3 = scmp.ne.s32.totalorder %s20_s13, %s1225_s21  ;;  %p1231_p5 = scmp.lt.s32.totalorder %s1225_s21, %s1225_s21 }
   0xb   :  { %p1232_p6 = por %p1231_p5, %p1230_p4 }
   0xd   :  { %p1233_p7 = pnand %p1232_p6, %p1226_p3 }
   0xf   :  { %1236 = shalt.err (!%p1233_p7)
}
  0x10   :  { %s1264_s22 = smov 128   ;;  %s1265_s23 = smov 8  }
  0x11   :  { %25 = dma.hbm_to_vmem [thread:$0]  %s1607_s2, 2048, %s20_s13, [#allocation3], %s1264_s22, %s1264_s22, %s1265_s23  }
  0x12   :  { %1259 = dma.done.wait [#allocation3], 2048  }
  0x13   :  { %1260 = vsyncadd [#allocation3], 4294965248  ;;  %v1266_v0 = vmov 0   ;;  %v32_v1 = vld [vmem:[%s1605_s0] sm:$0xff]  ;;  %v1306_v2 = vld [vmem:[#allocation2] sm:$0xff]  ;;  %v1267_v7 = vmov 0.0|0.0  }
  0x14   :  { %1210 = vset.pattern.permute.xlu0 %v1266_v0  ;;  %v1308_v3 = vld [vmem:[#allocation2 + $0x8] sm:$0xff]  ;;  %v76_v4 = vand.u32 4294901760, %v1306_v2  ;;  %1120 = vmatprep.subr.bf16.mxu0 %v1267_v7  ;;  %v1320_v8 = vld [vmem:[#allocation2 + $0x10] sm:$0xff]  ;;  %v1322_v9 = vld [vmem:[#allocation2 + $0x18] sm:$0xff]  ;;  %vm1268_vm0 = vmmov 0   ;;  %v1269_v59 = vmov 0.0  }
  0x15   :  { %35 = vperm.xlu0 %1210, %v32_v1   ;;  %v79_v5 = vand.u32 4294901760, %v1308_v3  ;;  %1048 = vmatprep.subr.bf16.mxu1 %v1267_v7  ;;  %v82_v10 = vand.u32 4294901760, %v1320_v8  ;;  %v85_v11 = vand.u32 4294901760, %v1322_v9  ;;  %v59_v13 = vld [vmem:[#allocation2 + $0x20] sm:$0xff]  ;;  %v60_v14 = vld [vmem:[#allocation2 + $0x28] sm:$0xff]  ;;  %v61_v18 = vld [vmem:[#allocation2 + $0x30] sm:$0xff] }
  0x16   :  { %v88_v15 = vand.u32 4294901760, %v59_v13  ;;  %v91_v16 = vand.u32 4294901760, %v60_v14  ;;  %v62_v19 = vld [vmem:[#allocation2 + $0x38] sm:$0xff]  ;;  %v94_v20 = vand.u32 4294901760, %v61_v18  ;;  %v63_v23 = vld [vmem:[#allocation2 + $0x40] sm:$0xff]  ;;  %v64_v24 = vld [vmem:[#allocation2 + $0x48] sm:$0xff]  ;;  %v1369_v42 = vsub.f32 %v1306_v2, %v76_v4  ;;  %975 = vmatprep.mubr.msk.f32.mxu0 %vm1268_vm0, %v1269_v59  ;;  %870 = vmatprep.mubr.msk.f32.mxu1 %vm1268_vm0, %v1269_v59 }
  0x17   :  { %v1316_v6 = vpack.c.bf16 %v79_v5, %v76_v4  ;;  %v1330_v12 = vpack.c.bf16 %v85_v11, %v82_v10  ;;  %v97_v21 = vand.u32 4294901760, %v62_v19  ;;  %v100_v25 = vand.u32 4294901760, %v63_v23  ;;  %v65_v28 = vld [vmem:[#allocation2 + $0x50] sm:$0xff]  ;;  %v66_v29 = vld [vmem:[#allocation2 + $0x58] sm:$0xff]  ;;  %v67_v33 = vld [vmem:[#allocation2 + $0x60] sm:$0xff]  ;;  %s1270_s5 = smov [#allocation5]  }
  0x18   :  { %v1336_v17 = vpack.c.bf16 %v91_v16, %v88_v15  ;;  %v103_v26 = vand.u32 4294901760, %v64_v24  ;;  %v106_v30 = vand.u32 4294901760, %v65_v28  ;;  %v109_v31 = vand.u32 4294901760, %v66_v29  ;;  %v68_v34 = vld [vmem:[#allocation2 + $0x68] sm:$0xff]  ;;  %v69_v38 = vld [vmem:[#allocation2 + $0x70] sm:$0xff]  ;;  %v70_v39 = vld [vmem:[#allocation2 + $0x78] sm:$0xff] }
  0x19   :  { %1122 = vmatpush3.bf16.msra.mxu0 %v1316_v6  ;;  %1050 = vmatpush3.bf16.msra.mxu1 %v1316_v6  ;;  %v1342_v22 = vpack.c.bf16 %v97_v21, %v94_v20  ;;  %v112_v35 = vand.u32 4294901760, %v67_v33  ;;  %v115_v36 = vand.u32 4294901760, %v68_v34  ;;  %v118_v40 = vand.u32 4294901760, %v69_v38  ;;  %s723_s6 = sshll.u32 %s1270_s5, 4  ;;  %s724_s6 = int_to_ptr.vmem [resolvable:$true] %s723_s6 }
  0x1a   :  { %1123 = vmatprep.subr.bf16.mxu0 %v1267_v7  ;;  %1051 = vmatprep.subr.bf16.mxu1 %v1267_v7  ;;  %v1348_v27 = vpack.c.bf16 %v103_v26, %v100_v25  ;;  %v1354_v32 = vpack.c.bf16 %v109_v31, %v106_v30  ;;  %v121_v41 = vand.u32 4294901760, %v70_v39  ;;  %v1374_v43 = vsub.f32 %v1308_v3, %v79_v5  ;;  %s1237_s7 = scalar_lea.vmem %s724_s6, 128  ;;  %p1242_p9 = scmp.lt.s32.totalorder %s724_s6, %s724_s6 }
  0x1b   :  { %v1360_v37 = vpack.c.bf16 %v115_v36, %v112_v35  ;;  %v1379_v45 = vsub.f32 %v1320_v8, %v82_v10  ;;  %v1382_v46 = vsub.f32 %v1322_v9, %v85_v11  ;;  %v1384_v47 = vsub.f32 %v59_v13, %v88_v15  ;;  %p1238_p8 = scmp.ne.s32.totalorder %s724_s6, %s1237_s7  ;;  %p1243_p10 = scmp.lt.s32.totalorder %s1237_s7, %s1237_s7 }
  0x1c   :  { %v1376_v44 = vpack.c.bf16 %v121_v41, %v118_v40  ;;  %v1386_v48 = vsub.f32 %v60_v14, %v91_v16  ;;  %v1389_v49 = vsub.f32 %v61_v18, %v94_v20  ;;  %v1391_v50 = vsub.f32 %v62_v19, %v97_v21 }
  0x1d   :  { %1125 = vmatpush3.bf16.msra.mxu0 %v1330_v12  ;;  %1053 = vmatpush3.bf16.msra.mxu1 %v1330_v12  ;;  %v1393_v51 = vsub.f32 %v63_v23, %v100_v25  ;;  %v1395_v52 = vsub.f32 %v64_v24, %v103_v26  ;;  %v1398_v53 = vsub.f32 %v65_v28, %v106_v30  ;;  %v169_v60 = vand.u32 4294901760, %v1369_v42  ;;  %p1244_p11 = por %p1243_p10, %p1242_p9 }
  0x1e   :  { %1126 = vmatprep.subr.bf16.mxu0 %v1267_v7  ;;  %1054 = vmatprep.subr.bf16.mxu1 %v1267_v7  ;;  %v1400_v54 = vsub.f32 %v66_v29, %v109_v31  ;;  %v1402_v55 = vsub.f32 %v67_v33, %v112_v35  ;;  %v1404_v56 = vsub.f32 %v68_v34, %v115_v36  ;;  %v176_v61 = vand.u32 4294901760, %v1374_v43 }
  0x1f   :  { %v1407_v57 = vsub.f32 %v69_v38, %v118_v40  ;;  %v1409_v58 = vsub.f32 %v70_v39, %v121_v41  ;;  %v183_v62 = vand.u32 4294901760, %v1379_v45  ;;  %v190_v63 = vand.u32 4294901760, %v1382_v46  ;;  %p1245_p12 = pnand %p1244_p11, %p1238_p8 }
  0x20   :  { %v1420_v0 = vpack.c.bf16 %v176_v61, %v169_v60  ;;  %v170_v1 = vsub.f32 %v1369_v42, %v169_v60  ;;  %v177_v2 = vsub.f32 %v1374_v43, %v176_v61  ;;  %v197_v13 = vand.u32 4294901760, %v1384_v47 }
  0x21   :  { %1128 = vmatpush3.bf16.msra.mxu0 %v1336_v17  ;;  %1056 = vmatpush3.bf16.msra.mxu1 %v1336_v17  ;;  %v1424_v3 = vpack.c.bf16 %v190_v63, %v183_v62  ;;  %v184_v4 = vsub.f32 %v1379_v45, %v183_v62  ;;  %v191_v5 = vsub.f32 %v1382_v46, %v190_v63  ;;  %v204_v14 = vand.u32 4294901760, %v1386_v48 }
  0x22   :  { %1129 = vmatprep.subr.bf16.mxu0 %v1267_v7  ;;  %1057 = vmatprep.subr.bf16.mxu1 %v1267_v7  ;;  %v171_v8 = vand.u32 4294901760, %v170_v1  ;;  %v178_v9 = vand.u32 4294901760, %v177_v2  ;;  %v198_v19 = vsub.f32 %v1384_v47, %v197_v13  ;;  %v211_v24 = vand.u32 4294901760, %v1389_v49 }
  0x23   :  { %v185_v10 = vand.u32 4294901760, %v184_v4  ;;  %v192_v11 = vand.u32 4294901760, %v191_v5  ;;  %v1434_v18 = vpack.c.bf16 %v204_v14, %v197_v13  ;;  %v205_v20 = vsub.f32 %v1386_v48, %v204_v14 }
  0x24   :  { %v1430_v15 = vpack.c.bf16 %v178_v9, %v171_v8  ;;  %v199_v21 = vand.u32 4294901760, %v198_v19  ;;  %v218_v25 = vand.u32 4294901760, %v1391_v50  ;;  %v212_v29 = vsub.f32 %v1389_v49, %v211_v24 }
  0x25   :  { %1131 = vmatpush3.bf16.msra.mxu0 %v1342_v22  ;;  %1059 = vmatpush3.bf16.msra.mxu1 %v1342_v22  ;;  %v1432_v16 = vpack.c.bf16 %v192_v11, %v185_v10  ;;  %v206_v23 = vand.u32 4294901760, %v205_v20  ;;  %v225_v34 = vand.u32 4294901760, %v1393_v51  ;;  %v232_v35 = vand.u32 4294901760, %v1395_v52 }
  0x26   :  { %1132 = vmatprep.subr.bf16.mxu0 %v1267_v7  ;;  %1060 = vmatprep.subr.bf16.mxu1 %v1267_v7  ;;  %v1442_v28 = vpack.c.bf16 %v218_v25, %v211_v24  ;;  %v219_v30 = vsub.f32 %v1391_v50, %v218_v25  ;;  %v213_v31 = vand.u32 4294901760, %v212_v29  ;;  %v239_v61 = vand.u32 4294901760, %v1398_v53 }
  0x27   :  { %v1440_v26 = vpack.c.bf16 %v206_v23, %v199_v21  ;;  %v1450_v38 = vpack.c.bf16 %v232_v35, %v225_v34  ;;  %v226_v39 = vsub.f32 %v1393_v51, %v225_v34  ;;  %v233_v40 = vsub.f32 %v1395_v52, %v232_v35 }
  0x28   :  { %v220_v33 = vand.u32 4294901760, %v219_v30  ;;  %v246_v62 = vand.u32 4294901760, %v1400_v54  ;;  %v240_v2 = vsub.f32 %v1398_v53, %v239_v61  ;;  %v253_v9 = vand.u32 4294901760, %v1402_v55 }
  0x29   :  { %1134 = vmatpush3.bf16.msra.mxu0 %v1348_v27  ;;  %1062 = vmatpush3.bf16.msra.mxu1 %v1348_v27  ;;  %v227_v41 = vand.u32 4294901760, %v226_v39  ;;  %v234_v60 = vand.u32 4294901760, %v233_v40  ;;  %v260_v10 = vand.u32 4294901760, %v1404_v56  ;;  %v267_v23 = vand.u32 4294901760, %v1407_v57 }
  0x2a   :  { %1135 = vmatprep.subr.bf16.mxu0 %v1267_v7  ;;  %1063 = vmatprep.subr.bf16.mxu1 %v1267_v7  ;;  %v1448_v36 = vpack.c.bf16 %v220_v33, %v213_v31  ;;  %v1458_v1 = vpack.c.bf16 %v246_v62, %v239_v61  ;;  %v247_v4 = vsub.f32 %v1400_v54, %v246_v62  ;;  %v241_v5 = vand.u32 4294901760, %v240_v2 }
  0x2b   :  { %v1456_v63 = vpack.c.bf16 %v234_v60, %v227_v41  ;;  %v1466_v13 = vpack.c.bf16 %v260_v10, %v253_v9  ;;  %v254_v14 = vsub.f32 %v1402_v55, %v253_v9  ;;  %v261_v19 = vsub.f32 %v1404_v56, %v260_v10  ;;  %v733_v9 = vld [vmem:[%s1606_s1 + $0x1] ss:$0 sm:$0xff] }
  0x2c   :  { %v248_v8 = vand.u32 4294901760, %v247_v4  ;;  %v274_v24 = vand.u32 4294901760, %v1409_v58  ;;  %v268_v30 = vsub.f32 %v1407_v57, %v267_v23  ;;  %v1097_v39 = vpack.c.bf16 %v1374_v43, %v1369_v42 }
  0x2d   :  { %1137 = vmatpush3.bf16.msra.mxu0 %v1354_v32  ;;  %1065 = vmatpush3.bf16.msra.mxu1 %v1354_v32  ;;  %v255_v20 = vand.u32 4294901760, %v254_v14  ;;  %v262_v21 = vand.u32 4294901760, %v261_v19  ;;  %v1100_v40 = vpack.c.bf16 %v1382_v46, %v1379_v45  ;;  %v1103_v41 = vpack.c.bf16 %v1386_v48, %v1384_v47 }
  0x2e   :  { %1138 = vmatprep.subr.bf16.mxu0 %v1267_v7  ;;  %1066 = vmatprep.subr.bf16.mxu1 %v1267_v7  ;;  %v1464_v11 = vpack.c.bf16 %v248_v8, %v241_v5  ;;  %v1166_v29 = vpack.c.bf16 %v274_v24, %v267_v23  ;;  %v275_v31 = vsub.f32 %v1409_v58, %v274_v24  ;;  %v269_v33 = vand.u32 4294901760, %v268_v30  ;;  %v732_v5 = vld [vmem:[%s1606_s1] ss:$0 sm:$0xff] }
  0x2f   :  { %v1091_v25 = vpack.c.bf16 %v262_v21, %v255_v20  ;;  %v1106_v60 = vpack.c.bf16 %v1391_v50, %v1389_v49  ;;  %v1109_v61 = vpack.c.bf16 %v1395_v52, %v1393_v51  ;;  %v1112_v62 = vpack.c.bf16 %v1400_v54, %v1398_v53 }
  0x30   :  { %v276_v34 = vand.u32 4294901760, %v275_v31  ;;  %v1115_v2 = vpack.c.bf16 %v1404_v56, %v1402_v55  ;;  %v1118_v4 = vpack.c.bf16 %v1409_v58, %v1407_v57 }
  0x31   :  { %1140 = vmatpush3.bf16.msra.mxu0 %v1360_v37  ;;  %1068 = vmatpush3.bf16.msra.mxu1 %v1360_v37 }
  0x32   :  { %1141 = vmatprep.subr.bf16.mxu0 %v1267_v7  ;;  %1069 = vmatprep.subr.bf16.mxu1 %v1267_v7  ;;  %v1094_v35 = vpack.c.bf16 %v276_v34, %v269_v33 }
  0x35   :  { %1143 = vmatpush3.bf16.msra.mxu0 %v1376_v44  ;;  %1071 = vmatpush3.bf16.msra.mxu1 %v1376_v44 }
  0x36   :  { %1144 = vmatprep.subr.bf16.mxu0 %v1267_v7  ;;  %1072 = vmatprep.subr.bf16.mxu1 %v1267_v7 }
  0x94   :  { %v36_v8 = vpop.permute.xlu0 %35 }
  0x95   :  { %v42_v10 = vmul.f32 %v732_v5, %v36_v8 }
  0x97   :  { %v47_v14 = vadd.f32 %v733_v9, %v42_v10 }
  0x99   :  { %v734_v19 = vmul.f32 -1.442695, %v47_v14 }
  0x9b   :  { %1211 = vpow2.f32 %v734_v19 }
  0xa5   :  { %v1212_v20 = vpop.eup %1211 }
  0xa6   :  { %v51_v21 = vadd.f32 1.0, %v1212_v20 }
  0xa8   :  { %1213 = vrcp.f32 %v51_v21 }
  0xb2   :  { %v1214_v23 = vpop.eup %1213 }
  0xb3   :  { %v54_v24 = vmul.f32 %v1214_v23, %v47_v14 }
  0xb5   :  { %v1496_v30 = vand.u32 4294901760, %v54_v24 }
  0xb7   :  { %v1499_v31 = vsub.f32 %v54_v24, %v1496_v30 }
  0xb9   :  { %v158_v33 = vand.u32 4294901760, %v1499_v31 }
  0xbb   :  { %976 = vmatmul.mubr.f32.vlgmr.msra.gmra.mrb[0].mxu0 %v158_v33  ;;  %v159_v34 = vsub.f32 %v1499_v31, %v158_v33 }
  0xbc   :  { %1146 = vmatpush3.bf16.msra.mxu0 %v1420_v0  ;;  %1010 = vmatprep.mubr.msk.f32.mxu0 %vm1268_vm0, %v1269_v59 }
  0xbd   :  { %1147 = vmatprep.subr.bf16.mxu0 %v1267_v7  ;;  %v160_v5 = vand.u32 4294901760, %v159_v34 }
  0xbf   :  { %871 = vmatmul.mubr.f32.vlgmr.msra.gmra.mrb[0].mxu1 %v160_v5 }
  0xc0   :  { %1074 = vmatpush3.bf16.msra.mxu1 %v1430_v15  ;;  %1149 = vmatpush3.bf16.msra.mxu0 %v1424_v3 }
  0xc1   :  { %1075 = vmatprep.subr.bf16.mxu1 %v1267_v7  ;;  %1150 = vmatprep.subr.bf16.mxu0 %v1267_v7 }
  0xc2   :  { %905 = vmatprep.mubr.msk.f32.mxu1 %vm1268_vm0, %v1269_v59 }
  0xc4   :  { %1077 = vmatpush3.bf16.msra.mxu1 %v1432_v16  ;;  %1152 = vmatpush3.bf16.msra.mxu0 %v1434_v18 }
  0xc5   :  { %1078 = vmatprep.subr.bf16.mxu1 %v1267_v7  ;;  %1153 = vmatprep.subr.bf16.mxu0 %v1267_v7 }
  0xc8   :  { %1080 = vmatpush3.bf16.msra.mxu1 %v1440_v26  ;;  %1155 = vmatpush3.bf16.msra.mxu0 %v1442_v28 }
  0xc9   :  { %1081 = vmatprep.subr.bf16.mxu1 %v1267_v7  ;;  %1156 = vmatprep.subr.bf16.mxu0 %v1267_v7 }
  0xcc   :  { %1083 = vmatpush3.bf16.msra.mxu1 %v1448_v36  ;;  %1158 = vmatpush3.bf16.msra.mxu0 %v1450_v38 }
  0xcd   :  { %1084 = vmatprep.subr.bf16.mxu1 %v1267_v7  ;;  %1159 = vmatprep.subr.bf16.mxu0 %v1267_v7 }
  0xd0   :  { %1086 = vmatpush3.bf16.msra.mxu1 %v1456_v63  ;;  %1161 = vmatpush3.bf16.msra.mxu0 %v1458_v1 }
  0xd1   :  { %1087 = vmatprep.subr.bf16.mxu1 %v1267_v7  ;;  %1162 = vmatprep.subr.bf16.mxu0 %v1267_v7 }
  0xd4   :  { %1089 = vmatpush3.bf16.msra.mxu1 %v1464_v11  ;;  %1164 = vmatpush3.bf16.msra.mxu0 %v1466_v13 }
  0xd5   :  { %1090 = vmatprep.subr.bf16.mxu1 %v1267_v7  ;;  %1165 = vmatprep.subr.bf16.mxu0 %v1267_v7 }
  0xd8   :  { %1092 = vmatpush3.bf16.msra.mxu1 %v1091_v25  ;;  %1167 = vmatpush3.bf16.msra.mxu0 %v1166_v29 }
  0xd9   :  { %1093 = vmatprep.subr.bf16.mxu1 %v1267_v7  ;;  %1168 = vmatprep.subr.bf16.mxu0 %v1267_v7 }
  0xdb   :  { %1011 = vmatmul.mubr.f32.vlgmr.msra.gmra.mrb[0].mxu0 %v1496_v30 }
  0xdc   :  { %1095 = vmatpush3.bf16.msra.mxu1 %v1094_v35  ;;  %1170 = vmatpush3.bf16.msra.mxu0 %v1316_v6 }
  0xdd   :  { %1096 = vmatprep.subr.bf16.mxu1 %v1267_v7  ;;  %1171 = vmatprep.subr.bf16.mxu0 %v1267_v7 }
  0xde   :  { %1045 = vmatprep.mubr.msk.f32.mxu0 %vm1268_vm0, %v1269_v59 }
  0xdf   :  { %906 = vmatmul.mubr.f32.vlgmr.msra.gmra.mrb[0].mxu1 %v1496_v30 }
  0xe0   :  { %1098 = vmatpush3.bf16.msra.mxu1 %v1097_v39  ;;  %1173 = vmatpush3.bf16.msra.mxu0 %v1330_v12 }
  0xe1   :  { %1099 = vmatprep.subr.bf16.mxu1 %v1267_v7  ;;  %1174 = vmatprep.subr.bf16.mxu0 %v1267_v7 }
  0xe2   :  { %940 = vmatprep.mubr.msk.f32.mxu1 %vm1268_vm0, %v1269_v59 }
  0xe4   :  { %1101 = vmatpush3.bf16.msra.mxu1 %v1100_v40  ;;  %1176 = vmatpush3.bf16.msra.mxu0 %v1336_v17  ;;  %v735_v17 = vld [vmem:[%s1606_s1 + $0x2] ss:$0 sm:$0xff] }
  0xe5   :  { %1102 = vmatprep.subr.bf16.mxu1 %v1267_v7  ;;  %1177 = vmatprep.subr.bf16.mxu0 %v1267_v7 }
  0xe8   :  { %1104 = vmatpush3.bf16.msra.mxu1 %v1103_v41  ;;  %1179 = vmatpush3.bf16.msra.mxu0 %v1342_v22 }
  0xe9   :  { %1105 = vmatprep.subr.bf16.mxu1 %v1267_v7  ;;  %1180 = vmatprep.subr.bf16.mxu0 %v1267_v7 }
  0xec   :  { %1107 = vmatpush3.bf16.msra.mxu1 %v1106_v60  ;;  %1182 = vmatpush3.bf16.msra.mxu0 %v1348_v27 }
  0xed   :  { %1108 = vmatprep.subr.bf16.mxu1 %v1267_v7  ;;  %1183 = vmatprep.subr.bf16.mxu0 %v1267_v7 }
  0xf0   :  { %1110 = vmatpush3.bf16.msra.mxu1 %v1109_v61  ;;  %1185 = vmatpush3.bf16.msra.mxu0 %v1354_v32 }
  0xf1   :  { %1111 = vmatprep.subr.bf16.mxu1 %v1267_v7  ;;  %1186 = vmatprep.subr.bf16.mxu0 %v1267_v7 }
  0xf4   :  { %1113 = vmatpush3.bf16.msra.mxu1 %v1112_v62  ;;  %1188 = vmatpush3.bf16.msra.mxu0 %v1360_v37 }
  0xf5   :  { %1114 = vmatprep.subr.bf16.mxu1 %v1267_v7  ;;  %1189 = vmatprep.subr.bf16.mxu0 %v1267_v7 }
  0xf8   :  { %1116 = vmatpush3.bf16.msra.mxu1 %v1115_v2  ;;  %1191 = vmatpush3.bf16.msra.mxu0 %v1376_v44 }
  0xf9   :  { %1117 = vmatprep.subr.bf16.mxu1 %v1267_v7 }
  0xfb   :  { %1046 = vmatmul.mubr.f32.vlgmr.msra.gmra.mrb[0].mxu0 %v1496_v30 }
  0xfc   :  { %1119 = vmatpush3.bf16.msra.mxu1 %v1118_v4 }
  0xff   :  { %941 = vmatmul.mubr.f32.vlgmr.msra.gmra.mrb[0].mxu1 %v1499_v31 }
 0x1ce   :  { %v712_v6 = vpop.f32.mrb[0].mxu0 }
 0x1cf   :  { %v1047_v12 = vpop.f32.mrb[1].mxu0 }
 0x1d2   :  { %v417_v22 = vpop.f32.mrb[0].mxu1 }
 0x1d3   :  { %v1192_v27 = vadd.f32 %v735_v17, %v417_v22  ;;  %v942_v32 = vpop.f32.mrb[1].mxu1 }
 0x1d5   :  { %v1193_v7 = vadd.f32 %v1192_v27, %v712_v6 }
 0x1d7   :  { %716 = vst [vmem:[#allocation5] sm:$0xff] %v1193_v7 }
 0x1d8   :  { %1248 = shalt.err (!%p1245_p12)
}
 0x1d9   :  { %s1249_s10 = scalar_lea.hbm %s1608_s3, 128 }
 0x1da   :  { %p1250_p13 = scmp.ne.s32.totalorder %s1608_s3, %s1249_s10  ;;  %p1253_p0 = scmp.lt.u32.totalorder %s1249_s10, %s1608_s3 }
 0x1dc   :  { %p1255_p1 = pnand %p1253_p0, %p1250_p13 }
 0x1de   :  { %1258 = shalt.err (!%p1255_p1)
}
 0x1df   :  { %726 = dma.vmem_to_hbm [thread:$0]  %s724_s6, 128, %s1608_s3, [#allocation4]  }
 0x1e0   :  { %1261 = dma.done.wait [#allocation4], 128  }
 0x1e1   :  { %1262 = vsyncadd [#allocation4], 4294967168 }
 0x1e2   :  { %730 = vsyncpa [#allocation3], 1 }
 0x1e3   :  { %731 = vsyncpa [#allocation4], 1 }

</bundles_post_ra>
